<compile_context>
chip_gen: v7x
topology: tpu7x:2x2x1
jax: 0.10.0
libtpu: 0.0.40
codegen_flags: <defaults>
</compile_context>

<pallas_src>
import functools

import jax
import jax.numpy as jnp
from jax import lax
from jax.experimental import pallas as pl
from jax.experimental.pallas import tpu as pltpu


def _round_up(x, m):
    return ((x + m - 1) // m) * m


def _mlp_kernel(x_ref,
                w1_ref, b1_ref, w2_ref, b2_ref,
                w3_ref, b3_ref, w4_ref, b4_ref,
                o_ref, *, chunk, num_chunks):
    """Fused 4x (Linear + ReLU), processed in `chunk`-row sub-tiles."""
    # Weights loaded once per grid step (tiny; stay resident across chunks).
    w1 = w1_ref[...]
    w2 = w2_ref[...]
    w3 = w3_ref[...]
    w4 = w4_ref[...]
    # Bias broadcasts hoisted out of the chunk loop (JAX does not CSE them).
    b1 = jnp.broadcast_to(b1_ref[...], (chunk, w1_ref.shape[1]))
    b2 = jnp.broadcast_to(b2_ref[...], (chunk, w2_ref.shape[1]))
    b3 = jnp.broadcast_to(b3_ref[...], (chunk, w3_ref.shape[1]))
    b4 = jnp.broadcast_to(b4_ref[...], (chunk, w4_ref.shape[1]))

    def compute_chunk(r0):
        # bf16 operands -> full-rate MXU; f32 accumulation via
        # preferred_element_type; bias add / ReLU in f32 (v5e has no bf16 VPU).
        h = x_ref[pl.ds(r0, chunk), :].astype(jnp.bfloat16)

        h = jnp.dot(h, w1, preferred_element_type=jnp.float32) + b1
        h = jnp.maximum(h, 0.0).astype(jnp.bfloat16)

        h = jnp.dot(h, w2, preferred_element_type=jnp.float32) + b2
        h = jnp.maximum(h, 0.0).astype(jnp.bfloat16)

        h = jnp.dot(h, w3, preferred_element_type=jnp.float32) + b3
        h = jnp.maximum(h, 0.0).astype(jnp.bfloat16)

        h = jnp.dot(h, w4, preferred_element_type=jnp.float32) + b4
        h = jnp.maximum(h, 0.0)

        # Write straight to o_ref so the chunk's activations die immediately.
        o_ref[pl.ds(r0, chunk), :] = h.astype(o_ref.dtype)

    if num_chunks <= 8:
        # Fully unrolled with static offsets: enough independent chunks for
        # MXU overlap, small enough to stay inside the 64-vreg file.
        for c in range(num_chunks):
            compute_chunk(c * chunk)
    else:
        # Larger chunk counts: bounded live ranges via fori_loop, modest unroll
        # keeps >=2 independent chunks in flight for latency hiding.
        def body(c, carry):
            r0 = pl.multiple_of(c * chunk, chunk)
            compute_chunk(r0)
            return carry

        lax.fori_loop(0, num_chunks, body, 0, unroll=4)


def _choose_tiling(batch, block_batch):
    """Pick (block_rows, chunk_rows, num_chunks) for the batch grid."""
    bb = min(_round_up(block_batch, 8), _round_up(batch, 8))
    if bb >= 256:
        chunk = 128                      # >=2 chunks in flight, MXU-friendly M
    elif bb >= 16 and bb % 16 == 0:
        chunk = bb // 2                  # keep 2 independent chunks even small
    else:
        chunk = bb
    bb = _round_up(bb, chunk)            # block is a whole number of chunks
    return bb, chunk, bb // chunk


@functools.partial(jax.jit, static_argnames=("block_batch", "out_dtype"))
def default_embedding_forward(x, params, *, block_batch=2048, out_dtype=None):
    """Runs the fused 4-layer MLP kernel, tiling over the batch dimension."""
    (w1, b1), (w2, b2), (w3, b3), (w4, b4) = params
    batch, input_dim = x.shape
    emb = w4.shape[1]
    out_dtype = x.dtype if out_dtype is None else out_dtype

    bb, chunk, num_chunks = _choose_tiling(batch, block_batch)
    grid = (pl.cdiv(batch, bb),)   # final block may run OOB; writes are masked

    kernel = functools.partial(_mlp_kernel, chunk=chunk, num_chunks=num_chunks)

    def resident(shape):
        # Whole weight/bias resident in VMEM; block index constant over grid.
        return pl.BlockSpec(shape, lambda i: (0, 0))

    out = pl.pallas_call(
        kernel,
        out_shape=jax.ShapeDtypeStruct((batch, emb), out_dtype),
        grid=grid,
        in_specs=[
            pl.BlockSpec((bb, input_dim), lambda i: (i, 0)),
            resident(w1.shape), resident(b1.shape),
            resident(w2.shape), resident(b2.shape),
            resident(w3.shape), resident(b3.shape),
            resident(w4.shape), resident(b4.shape),
        ],
        out_specs=pl.BlockSpec((bb, emb), lambda i: (i, 0)),
        compiler_params=pltpu.CompilerParams(
            dimension_semantics=("parallel",)),
    )(x, w1, b1, w2, b2, w3, b3, w4, b4)

    return out


def init_params(key, input_dim, embedding_dim, *, weight_dtype=jnp.bfloat16):
    """nn.Linear-style U(-1/sqrt(fan_in), 1/sqrt(fan_in)) init.

    Weights are stored [in, out] (kernel computes x @ W + b, equivalent to
    PyTorch's x @ W.T) and cast to bf16 for full-rate MXU matmuls with f32
    accumulation; biases stay f32.  (bf16 weights are an intentional deviation
    from strict f32 PyTorch parity.)
    """
    dims = [input_dim, embedding_dim // 8, embedding_dim // 4,
            embedding_dim // 2, embedding_dim]
    params = []
    for fan_in, fan_out in zip(dims[:-1], dims[1:]):
        key, kw, kb = jax.random.split(key, 3)
        bound = 1.0 / jnp.sqrt(jnp.float32(fan_in))
        w = jax.random.uniform(kw, (fan_in, fan_out), jnp.float32, -bound, bound)
        b = jax.random.uniform(kb, (1, fan_out), jnp.float32, -bound, bound)
        params.append((w.astype(weight_dtype), b))
    return params


def reference_forward(x, params, out_dtype=None):
    """Pure-JAX reference with the same bf16-operand / f32-accumulate math."""
    out_dtype = x.dtype if out_dtype is None else out_dtype
    h = x
    for w, b in params:
        h = jnp.dot(h.astype(w.dtype), w, preferred_element_type=jnp.float32) + b
        h = jnp.maximum(h, 0.0)
    return h.astype(out_dtype)


# TODO(synk): the flatbuffer `unpack_scalar` / `unpack_vector` helpers are host-side
# data marshalling with no Pallas equivalent; only the nn.Sequential forward is kernelized.


if __name__ == "__main__":
    key = jax.random.PRNGKey(0)
    key, kx = jax.random.split(key)

    batch = 16
    input_dim = 8          # vector-valued distribution (input_dim != 1)
    embedding_dim = 128    # hidden dims: 16 -> 32 -> 64 -> 128

    x = jax.random.normal(kx, (batch, input_dim), jnp.float32)
    params = init_params(key, input_dim, embedding_dim)

    out = default_embedding_forward(x, params)
    out = jax.block_until_ready(out)

    ref = reference_forward(x, params)
    assert out.shape == (batch, embedding_dim)
    assert out.dtype == x.dtype
    assert jnp.allclose(out.astype(jnp.float32), ref.astype(jnp.float32),
                        atol=1e-2, rtol=1e-2), "mismatch vs reference"

    # Exercise a ragged batch (batch % block != 0) to cover the OOB-masked
    # final block path that replaced the host-side pad/slice.
    batch2 = 37
    key, kx2 = jax.random.split(key)
    x2 = jax.random.normal(kx2, (batch2, input_dim), jnp.float32)
    out2 = jax.block_until_ready(default_embedding_forward(x2, params))
    ref2 = reference_forward(x2, params)
    assert out2.shape == (batch2, embedding_dim)
    assert jnp.allclose(out2.astype(jnp.float32), ref2.astype(jnp.float32),
                        atol=1e-2, rtol=1e-2), "mismatch vs reference (ragged)"

    print("KERNEL_OK")
</pallas_src>

<mosaic_0001>
module attributes {stable_mosaic.version = 11 : i64} {
  func.func @_mlp_kernel(%arg0: i32, %arg1: memref<16x8xf32, #tpu.memory_space<vmem>>, %arg2: memref<8x16xbf16, #tpu.memory_space<vmem>>, %arg3: memref<1x16xf32, #tpu.memory_space<vmem>>, %arg4: memref<16x32xbf16, #tpu.memory_space<vmem>>, %arg5: memref<1x32xf32, #tpu.memory_space<vmem>>, %arg6: memref<32x64xbf16, #tpu.memory_space<vmem>>, %arg7: memref<1x64xf32, #tpu.memory_space<vmem>>, %arg8: memref<64x128xbf16, #tpu.memory_space<vmem>>, %arg9: memref<1x128xf32, #tpu.memory_space<vmem>>, %arg10: memref<16x128xf32, #tpu.memory_space<vmem>>) attributes {dimension_semantics = [#tpu.dimension_semantics<parallel>], iteration_bounds = array<i64: 1>, scalar_prefetch = 0 : i64, scratch_operands = 0 : i64, tpu.core_type = #tpu.core_type<tc>, window_params = [{transform_indices = @transform_0, window_bounds = array<i64: 16, 8>}, {pipeline_mode = #tpu.pipeline_mode<synchronous>, transform_indices = @transform_1, window_bounds = array<i64: 8, 16>}, {pipeline_mode = #tpu.pipeline_mode<synchronous>, transform_indices = @transform_2, window_bounds = array<i64: 1, 16>}, {pipeline_mode = #tpu.pipeline_mode<synchronous>, transform_indices = @transform_3, window_bounds = array<i64: 16, 32>}, {pipeline_mode = #tpu.pipeline_mode<synchronous>, transform_indices = @transform_4, window_bounds = array<i64: 1, 32>}, {pipeline_mode = #tpu.pipeline_mode<synchronous>, transform_indices = @transform_5, window_bounds = array<i64: 32, 64>}, {pipeline_mode = #tpu.pipeline_mode<synchronous>, transform_indices = @transform_6, window_bounds = array<i64: 1, 64>}, {pipeline_mode = #tpu.pipeline_mode<synchronous>, transform_indices = @transform_7, window_bounds = array<i64: 64, 128>}, {pipeline_mode = #tpu.pipeline_mode<synchronous>, transform_indices = @transform_8, window_bounds = array<i64: 1, 128>}, {transform_indices = @transform_9, window_bounds = array<i64: 16, 128>}]} {
    %c0 = arith.constant 0 : index
    %c0_0 = arith.constant 0 : index
    %0 = vector.load %arg2[%c0, %c0_0] : memref<8x16xbf16, #tpu.memory_space<vmem>>, vector<8x16xbf16>
    %c0_1 = arith.constant 0 : index
    %c0_2 = arith.constant 0 : index
    %1 = vector.load %arg4[%c0_1, %c0_2] : memref<16x32xbf16, #tpu.memory_space<vmem>>, vector<16x32xbf16>
    %c0_3 = arith.constant 0 : index
    %c0_4 = arith.constant 0 : index
    %2 = vector.load %arg6[%c0_3, %c0_4] : memref<32x64xbf16, #tpu.memory_space<vmem>>, vector<32x64xbf16>
    %c0_5 = arith.constant 0 : index
    %c0_6 = arith.constant 0 : index
    %3 = vector.load %arg8[%c0_5, %c0_6] : memref<64x128xbf16, #tpu.memory_space<vmem>>, vector<64x128xbf16>
    %c0_7 = arith.constant 0 : index
    %c0_8 = arith.constant 0 : index
    %4 = vector.load %arg3[%c0_7, %c0_8] : memref<1x16xf32, #tpu.memory_space<vmem>>, vector<1x16xf32>
    %5 = vector.shape_cast %4 : vector<1x16xf32> to vector<1x16xf32>
    %6 = vector.broadcast %5 : vector<1x16xf32> to vector<8x16xf32>
    %c0_9 = arith.constant 0 : index
    %c0_10 = arith.constant 0 : index
    %7 = vector.load %arg5[%c0_9, %c0_10] : memref<1x32xf32, #tpu.memory_space<vmem>>, vector<1x32xf32>
    %8 = vector.shape_cast %7 : vector<1x32xf32> to vector<1x32xf32>
    %9 = vector.broadcast %8 : vector<1x32xf32> to vector<8x32xf32>
    %c0_11 = arith.constant 0 : index
    %c0_12 = arith.constant 0 : index
    %10 = vector.load %arg7[%c0_11, %c0_12] : memref<1x64xf32, #tpu.memory_space<vmem>>, vector<1x64xf32>
    %11 = vector.shape_cast %10 : vector<1x64xf32> to vector<1x64xf32>
    %12 = vector.broadcast %11 : vector<1x64xf32> to vector<8x64xf32>
    %c0_13 = arith.constant 0 : index
    %c0_14 = arith.constant 0 : index
    %13 = vector.load %arg9[%c0_13, %c0_14] : memref<1x128xf32, #tpu.memory_space<vmem>>, vector<1x128xf32>
    %14 = vector.shape_cast %13 : vector<1x128xf32> to vector<1x128xf32>
    %15 = vector.broadcast %14 : vector<1x128xf32> to vector<8x128xf32>
    %c0_15 = arith.constant 0 : index
    %c0_16 = arith.constant 0 : index
    %16 = vector.load %arg1[%c0_15, %c0_16] : memref<16x8xf32, #tpu.memory_space<vmem>>, vector<8x8xf32>
    %17 = arith.truncf %16 : vector<8x8xf32> to vector<8x8xbf16>
    %cst = arith.constant dense<0.000000e+00> : vector<8x16xf32>
    %18 = tpu.matmul %17, %0, %cst {dimension_numbers = #tpu.dot_dimension_numbers<[1], [0], [0], [1], [0, 0, 1, 1], [], []>} : vector<8x8xbf16>, vector<8x16xbf16>, vector<8x16xf32> -> vector<8x16xf32>
    %19 = arith.addf %18, %6 : vector<8x16xf32>
    %cst_17 = arith.constant 0.000000e+00 : f32
    %20 = vector.broadcast %cst_17 : f32 to vector<8x16xf32>
    %21 = arith.maximumf %19, %20 : vector<8x16xf32>
    %22 = arith.truncf %21 : vector<8x16xf32> to vector<8x16xbf16>
    %cst_18 = arith.constant dense<0.000000e+00> : vector<8x32xf32>
    %23 = tpu.matmul %22, %1, %cst_18 {dimension_numbers = #tpu.dot_dimension_numbers<[1], [0], [0], [1], [0, 0, 1, 1], [], []>} : vector<8x16xbf16>, vector<16x32xbf16>, vector<8x32xf32> -> vector<8x32xf32>
    %24 = arith.addf %23, %9 : vector<8x32xf32>
    %cst_19 = arith.constant 0.000000e+00 : f32
    %25 = vector.broadcast %cst_19 : f32 to vector<8x32xf32>
    %26 = arith.maximumf %24, %25 : vector<8x32xf32>
    %27 = arith.truncf %26 : vector<8x32xf32> to vector<8x32xbf16>
    %cst_20 = arith.constant dense<0.000000e+00> : vector<8x64xf32>
    %28 = tpu.matmul %27, %2, %cst_20 {dimension_numbers = #tpu.dot_dimension_numbers<[1], [0], [0], [1], [0, 0, 1, 1], [], []>} : vector<8x32xbf16>, vector<32x64xbf16>, vector<8x64xf32> -> vector<8x64xf32>
    %29 = arith.addf %28, %12 : vector<8x64xf32>
    %cst_21 = arith.constant 0.000000e+00 : f32
    %30 = vector.broadcast %cst_21 : f32 to vector<8x64xf32>
    %31 = arith.maximumf %29, %30 : vector<8x64xf32>
    %32 = arith.truncf %31 : vector<8x64xf32> to vector<8x64xbf16>
    %cst_22 = arith.constant dense<0.000000e+00> : vector<8x128xf32>
    %33 = tpu.matmul %32, %3, %cst_22 {dimension_numbers = #tpu.dot_dimension_numbers<[1], [0], [0], [1], [0, 0, 1, 1], [], []>} : vector<8x64xbf16>, vector<64x128xbf16>, vector<8x128xf32> -> vector<8x128xf32>
    %34 = arith.addf %33, %15 : vector<8x128xf32>
    %cst_23 = arith.constant 0.000000e+00 : f32
    %35 = vector.broadcast %cst_23 : f32 to vector<8x128xf32>
    %36 = arith.maximumf %34, %35 : vector<8x128xf32>
    %c0_24 = arith.constant 0 : index
    %c0_25 = arith.constant 0 : index
    %37 = vector.load %arg10[%c0_24, %c0_25] : memref<16x128xf32, #tpu.memory_space<vmem>>, vector<8x128xf32>
    tpu.vector_store %arg10[%c0_24, %c0_25], %36 {strides = array<i32>} : memref<16x128xf32, #tpu.memory_space<vmem>>, vector<8x128xf32>,
    %c8 = arith.constant 8 : index
    %c0_26 = arith.constant 0 : index
    %38 = vector.load %arg1[%c8, %c0_26] : memref<16x8xf32, #tpu.memory_space<vmem>>, vector<8x8xf32>
    %39 = arith.truncf %38 : vector<8x8xf32> to vector<8x8xbf16>
    %cst_27 = arith.constant dense<0.000000e+00> : vector<8x16xf32>
    %40 = tpu.matmul %39, %0, %cst_27 {dimension_numbers = #tpu.dot_dimension_numbers<[1], [0], [0], [1], [0, 0, 1, 1], [], []>} : vector<8x8xbf16>, vector<8x16xbf16>, vector<8x16xf32> -> vector<8x16xf32>
    %41 = arith.addf %40, %6 : vector<8x16xf32>
    %cst_28 = arith.constant 0.000000e+00 : f32
    %42 = vector.broadcast %cst_28 : f32 to vector<8x16xf32>
    %43 = arith.maximumf %41, %42 : vector<8x16xf32>
    %44 = arith.truncf %43 : vector<8x16xf32> to vector<8x16xbf16>
    %cst_29 = arith.constant dense<0.000000e+00> : vector<8x32xf32>
    %45 = tpu.matmul %44, %1, %cst_29 {dimension_numbers = #tpu.dot_dimension_numbers<[1], [0], [0], [1], [0, 0, 1, 1], [], []>} : vector<8x16xbf16>, vector<16x32xbf16>, vector<8x32xf32> -> vector<8x32xf32>
    %46 = arith.addf %45, %9 : vector<8x32xf32>
    %cst_30 = arith.constant 0.000000e+00 : f32
    %47 = vector.broadcast %cst_30 : f32 to vector<8x32xf32>
    %48 = arith.maximumf %46, %47 : vector<8x32xf32>
    %49 = arith.truncf %48 : vector<8x32xf32> to vector<8x32xbf16>
    %cst_31 = arith.constant dense<0.000000e+00> : vector<8x64xf32>
    %50 = tpu.matmul %49, %2, %cst_31 {dimension_numbers = #tpu.dot_dimension_numbers<[1], [0], [0], [1], [0, 0, 1, 1], [], []>} : vector<8x32xbf16>, vector<32x64xbf16>, vector<8x64xf32> -> vector<8x64xf32>
    %51 = arith.addf %50, %12 : vector<8x64xf32>
    %cst_32 = arith.constant 0.000000e+00 : f32
    %52 = vector.broadcast %cst_32 : f32 to vector<8x64xf32>
    %53 = arith.maximumf %51, %52 : vector<8x64xf32>
    %54 = arith.truncf %53 : vector<8x64xf32> to vector<8x64xbf16>
    %cst_33 = arith.constant dense<0.000000e+00> : vector<8x128xf32>
    %55 = tpu.matmul %54, %3, %cst_33 {dimension_numbers = #tpu.dot_dimension_numbers<[1], [0], [0], [1], [0, 0, 1, 1], [], []>} : vector<8x64xbf16>, vector<64x128xbf16>, vector<8x128xf32> -> vector<8x128xf32>
    %56 = arith.addf %55, %15 : vector<8x128xf32>
    %cst_34 = arith.constant 0.000000e+00 : f32
    %57 = vector.broadcast %cst_34 : f32 to vector<8x128xf32>
    %58 = arith.maximumf %56, %57 : vector<8x128xf32>
    %c8_35 = arith.constant 8 : index
    %c0_36 = arith.constant 0 : index
    %59 = vector.load %arg10[%c8_35, %c0_36] : memref<16x128xf32, #tpu.memory_space<vmem>>, vector<8x128xf32>
    tpu.vector_store %arg10[%c8_35, %c0_36], %58 {strides = array<i32>} : memref<16x128xf32, #tpu.memory_space<vmem>>, vector<8x128xf32>,
    return
  }
  func.func @transform_0(%arg0: i32) -> (i32, i32) {
    %c0_i32 = arith.constant 0 : i32
    %c0_i32_0 = arith.constant 0 : i32
    return %arg0, %c0_i32 : i32, i32
  }
  func.func @transform_1(%arg0: i32) -> (i32, i32) {
    %c0_i32 = arith.constant 0 : i32
    %c0_i32_0 = arith.constant 0 : i32
    %c0_i32_1 = arith.constant 0 : i32
    return %c0_i32, %c0_i32_0 : i32, i32
  }
  func.func @transform_2(%arg0: i32) -> (i32, i32) {
    %c0_i32 = arith.constant 0 : i32
    %c0_i32_0 = arith.constant 0 : i32
    %c0_i32_1 = arith.constant 0 : i32
    return %c0_i32, %c0_i32_0 : i32, i32
  }
  func.func @transform_3(%arg0: i32) -> (i32, i32) {
    %c0_i32 = arith.constant 0 : i32
    %c0_i32_0 = arith.constant 0 : i32
    %c0_i32_1 = arith.constant 0 : i32
    return %c0_i32, %c0_i32_0 : i32, i32
  }
  func.func @transform_4(%arg0: i32) -> (i32, i32) {
    %c0_i32 = arith.constant 0 : i32
    %c0_i32_0 = arith.constant 0 : i32
    %c0_i32_1 = arith.constant 0 : i32
    return %c0_i32, %c0_i32_0 : i32, i32
  }
  func.func @transform_5(%arg0: i32) -> (i32, i32) {
    %c0_i32 = arith.constant 0 : i32
    %c0_i32_0 = arith.constant 0 : i32
    %c0_i32_1 = arith.constant 0 : i32
    return %c0_i32, %c0_i32_0 : i32, i32
  }
  func.func @transform_6(%arg0: i32) -> (i32, i32) {
    %c0_i32 = arith.constant 0 : i32
    %c0_i32_0 = arith.constant 0 : i32
    %c0_i32_1 = arith.constant 0 : i32
    return %c0_i32, %c0_i32_0 : i32, i32
  }
  func.func @transform_7(%arg0: i32) -> (i32, i32) {
    %c0_i32 = arith.constant 0 : i32
    %c0_i32_0 = arith.constant 0 : i32
    %c0_i32_1 = arith.constant 0 : i32
    return %c0_i32, %c0_i32_0 : i32, i32
  }
  func.func @transform_8(%arg0: i32) -> (i32, i32) {
    %c0_i32 = arith.constant 0 : i32
    %c0_i32_0 = arith.constant 0 : i32
    %c0_i32_1 = arith.constant 0 : i32
    return %c0_i32, %c0_i32_0 : i32, i32
  }
  func.func @transform_9(%arg0: i32) -> (i32, i32) {
    %c0_i32 = arith.constant 0 : i32
    %c0_i32_0 = arith.constant 0 : i32
    return %arg0, %c0_i32 : i32, i32
  }
}

</mosaic_0001>

<bundles_post_ra>
// kernel: default_embedding_forward.1
= control target key start
LH: loop header
LB: loop body
LE: loop exit
PB: predicated region body
PF: predicated region fallthrough
CT: control target
= control target key end

     0   :  { %14 = vsyncpa [#allocation3], 0  ;;  %s947_s0 = inlined_call_operand.vmem [shape: f32[16,8], index: 0, kind: input, shape index: {}]   ;;  %s948_s1 = inlined_call_operand.hbm [shape: bf16[8,16], index: 1, kind: input, shape index: {}]   ;;  %s949_s2 = inlined_call_operand.vmem [shape: f32[1,16], index: 2, kind: input, shape index: {}]   ;;  %s950_s3 = inlined_call_operand.hbm [shape: bf16[16,32], index: 3, kind: input, shape index: {}]   ;;  %s951_s4 = inlined_call_operand.vmem [shape: f32[1,32], index: 4, kind: input, shape index: {}]   ;;  %s952_s5 = inlined_call_operand.vmem [shape: bf16[32,64], index: 5, kind: input, shape index: {}]   ;;  %s953_s6 = inlined_call_operand.hbm [shape: f32[1,64], index: 6, kind: input, shape index: {}]   ;;  %s954_s7 = inlined_call_operand.vmem [shape: bf16[64,128], index: 7, kind: input, shape index: {}]   ;;  %s955_s8 = inlined_call_operand.vmem [shape: f32[1,128], index: 8, kind: input, shape index: {}]   ;;  %s956_s9 = inlined_call_operand.hbm [shape: f32[16,128], index: 9, kind: output, shape index: {}]  }
   0x1   :  { %15 = vsyncpa [#allocation6], 0 }
   0x2   :  { %16 = vsyncpa [#allocation4], 0  ;;  %s764_s30 = smov [#allocation5]   ;;  %s670_s13 = scalar_lea.hbm %s950_s3, 128 }
   0x3   :  { %s36_s10 = sshll.u32 %s764_s30, 4  ;;  %p671_p0 = scmp.ne.s32.totalorder %s950_s3, %s670_s13  ;;  %s37_s10 = int_to_ptr.vmem [resolvable:$true] %s36_s10 }
   0x4   :  { %p674_p1 = scmp.lt.u32.totalorder %s670_s13, %s950_s3 }
   0x6   :  { %p676_p2 = pnand %p674_p1, %p671_p0 }
   0x8   :  { %679 = shalt.err (!%p676_p2)
}
   0x9   :  { %s680_s18 = scalar_lea.vmem %s37_s10, 128  ;;  %p685_p4 = scmp.lt.s32.totalorder %s37_s10, %s37_s10 }
   0xa   :  { %p681_p3 = scmp.ne.s32.totalorder %s37_s10, %s680_s18  ;;  %p686_p5 = scmp.lt.s32.totalorder %s680_s18, %s680_s18 }
   0xc   :  { %p687_p6 = por %p686_p5, %p685_p4 }
   0xe   :  { %p688_p7 = pnand %p687_p6, %p681_p3 }
  0x10   :  { %691 = shalt.err (!%p688_p7)
}
  0x11   :  { %s765_s19 = smov 64   ;;  %s766_s20 = smov 4  }
  0x12   :  { %42 = dma.hbm_to_vmem [thread:$0]  %s950_s3, 128, %s37_s10, [#allocation6], %s765_s19, %s765_s19, %s766_s20  }
  0x13   :  { %s767_s23 = smov [#allocation2]   ;;  %s768_s25 = smov [#allocation7]  }
  0x14   :  { %s25_s24 = sshll.u32 %s767_s23, 4  ;;  %s53_s26 = sshll.u32 %s768_s25, 4  ;;  %s26_s24 = int_to_ptr.vmem [resolvable:$true] %s25_s24  ;;  %s54_s26 = int_to_ptr.vmem [resolvable:$true] %s53_s26 }
  0x15   :  { %s692_s29 = scalar_lea.hbm %s948_s1, 64 }
  0x16   :  { %p693_p8 = scmp.ne.s32.totalorder %s948_s1, %s692_s29  ;;  %p696_p9 = scmp.lt.u32.totalorder %s692_s29, %s948_s1 }
  0x18   :  { %p698_p10 = pnand %p696_p9, %p693_p8 }
  0x1a   :  { %701 = shalt.err (!%p698_p10)
}
  0x1b   :  { %s702_s3 = scalar_lea.vmem %s26_s24, 64  ;;  %p707_p12 = scmp.lt.s32.totalorder %s26_s24, %s26_s24 }
  0x1c   :  { %p703_p11 = scmp.ne.s32.totalorder %s26_s24, %s702_s3  ;;  %p708_p13 = scmp.lt.s32.totalorder %s702_s3, %s702_s3 }
  0x1e   :  { %p709_p0 = por %p708_p13, %p707_p12 }
  0x20   :  { %p710_p1 = pnand %p709_p0, %p703_p11 }
  0x22   :  { %713 = shalt.err (!%p710_p1)
}
  0x23   :  { %28 = dma.hbm_to_vmem [thread:$0]  %s948_s1, 64, %s26_s24, [#allocation3]  }
  0x24   :  { %s714_s17 = scalar_lea.hbm %s953_s6, 16 }
  0x25   :  { %p715_p2 = scmp.ne.s32.totalorder %s953_s6, %s714_s17  ;;  %p718_p3 = scmp.lt.u32.totalorder %s714_s17, %s953_s6 }
  0x27   :  { %p720_p4 = pnand %p718_p3, %p715_p2 }
  0x29   :  { %723 = shalt.err (!%p720_p4)
}
  0x2a   :  { %s724_s22 = scalar_lea.vmem %s54_s26, 16  ;;  %s728_s23 = scalar_lea.vmem %s54_s26, 32 }
  0x2b   :  { %p725_p5 = scmp.ne.s32.totalorder %s54_s26, %s724_s22  ;;  %p729_p6 = scmp.lt.s32.totalorder %s54_s26, %s54_s26 }
  0x2c   :  { %p730_p7 = scmp.lt.s32.totalorder %s728_s23, %s724_s22 }
  0x2e   :  { %p731_p8 = por %p730_p7, %p729_p6 }
  0x30   :  { %p732_p9 = pnand %p731_p8, %p725_p5 }
  0x32   :  { %735 = shalt.err (!%p732_p9)
}
  0x33   :  { %56 = dma.hbm_to_vmem [thread:$0]  %s953_s6, 16, %s54_s26, [#allocation6]  }
  0x34   :  { %758 = dma.done.wait [#allocation3], 64  }
  0x35   :  { %759 = vsyncadd [#allocation3], 4294967232 }
  0x36   :  { %760 = dma.done.wait [#allocation6], 144  }
  0x37   :  { %761 = vsyncadd [#allocation6], 4294967152  ;;  %v769_v0 = vmov 0.0   ;;  %vm770_vm0 = vmmov 0   ;;  %vm120_vm1 = vcmask 1043456   ;;  %v114_v2 = vld [vmem:[%s947_s0] sm:$0xff] }
  0x38   :  { %589 = vmatprep.subr.bf16.mxu0 %v769_v0  ;;  %591 = vmatprep.mubr.msk.bf16.mxu0 %vm770_vm0, %v769_v0  ;;  %v71_v1 = vld [vmem:[#allocation2] sm:$0xf]  ;;  %v115_v4 = vpack.c.bf16 %v114_v2, %v114_v2  ;;  %vm116_vm2 = vcmask 64512   ;;  %v663_v5 = vld [vmem:[#allocation5] sm:$0xff]   ;;  %vm172_vm3 = vcmask 130048   ;;  %v668_v27 = vld [vmem:[%s954_s7 + $0x10] sm:$0xff]  }
  0x39   :  { %595 = vmatprep.subr.bf16.mxu1 %v769_v0  ;;  %597 = vmatprep.mubr.msk.bf16.mxu1 %vm770_vm0, %v769_v0  ;;  %v122_v3 = vsel %vm120_vm1, %v71_v1, 0  ;;  %v346_v6 = vld [vmem:[%s947_s0 + $0x8] sm:$0xff]  ;;  %v546_v8 = vld [vmem:[%s949_s2] ss:$0 sm:$0xff]  ;;  %vm230_vm4 = vcmask 261120   ;;  %v669_v36 = vld [vmem:[%s954_s7 + $0x18] sm:$0xff]  }
  0x3a   :  { %590 = vmatpush3.bf16.msra.mxu0 %v122_v3  ;;  %596 = vmatpush3.bf16.msra.mxu1 %v663_v5  ;;  %v347_v7 = vpack.c.bf16 %v346_v6, %v346_v6  ;;  %v886_v15 = vld [vmem:[%s952_s5] sm:$0xff]   ;;  %v665_v17 = vld [vmem:[%s952_s5 + $0x8] sm:$0xff]   ;;  %vm300_vm5 = vcmask 523264   ;;  %s771_s19 = smov [#allocation8]  }
  0x3b   :  { %621 = vmatprep.subr.bf16.mxu0 %v769_v0  ;;  %601 = vmatprep.subr.bf16.mxu1 %v769_v0  ;;  %v666_v25 = vld [vmem:[%s954_s7] sm:$0xff]   ;;  %v667_v26 = vld [vmem:[%s954_s7 + $0x8] sm:$0xff]   ;;  %s533_s20 = sshll.u32 %s771_s19, 4  ;;  %s534_s20 = int_to_ptr.vmem [resolvable:$true] %s533_s20 }
  0x3c   :  { %v547_v28 = vld [vmem:[%s951_s4] ss:$0 sm:$0xff]  ;;  %v548_v41 = vld [vmem:[#allocation7] ss:$0 sm:$0xff]  ;;  %p741_p11 = scmp.lt.s32.totalorder %s534_s20, %s534_s20 }
  0x3d   :  { %592 = vmatmul.mubr.msk.bf16.vlgmr.msra.gmra.mrb[0].mxu0 %vm116_vm2, %v115_v4  ;;  %v549_v52 = vld [vmem:[%s955_s8] ss:$0 sm:$0xff]  ;;  %s736_s8 = scalar_lea.vmem %s534_s20, 256 }
  0x3e   :  { %622 = vmatpush3.bf16.msra.mxu0 %v122_v3  ;;  %623 = vmatprep.mubr.msk.bf16.mxu0 %vm770_vm0, %v769_v0  ;;  %p737_p10 = scmp.ne.s32.totalorder %s534_s20, %s736_s8  ;;  %p742_p12 = scmp.lt.s32.totalorder %s736_s8, %s736_s8 }
  0x3f   :  { %627 = vmatprep.subr.bf16.mxu0 %v769_v0 }
  0x40   :  { %p743_p13 = por %p742_p12, %p741_p11 }
  0x42   :  { %p744_p0 = pnand %p743_p13, %p737_p10 }
  0x45   :  { %624 = vmatmul.mubr.msk.bf16.vlgmr.msra.gmra.mrb[4].mxu0 %vm116_vm2, %v347_v7 }
  0x46   :  { %628 = vmatpush3.bf16.msra.mxu0 %v663_v5  ;;  %629 = vmatprep.mubr.msk.bf16.mxu0 %vm770_vm0, %v769_v0 }
  0x47   :  { %641 = vmatprep.subr.bf16.mxu0 %v769_v0 }
 0x110   :  { %v158_v9 = vpop.f32.mrb[0].mxu0 }
 0x111   :  { %v159_v10 = vadd.f32 %v546_v8, %v158_v9  ;;  %v593_v11 = vpop.f32.mrb[1].mxu0 }
 0x112   :  { %v161_v12 = vpop.f32.mrb[2].mxu0 }
 0x113   :  { %v164_v13 = vmax.f32 %v159_v10, 0.0  ;;  %v594_v14 = vpop.f32.mrb[3].mxu0 }
 0x115   :  { %v165_v16 = vpack.c.bf16 %v164_v13, %v164_v13 }
 0x117   :  { %598 = vmatmul.mubr.msk.bf16.vlgmr.msra.gmra.mrb[0].mxu1 %vm172_vm3, %v165_v16 }
 0x118   :  { %602 = vmatpush3.bf16.msra.mxu1 %v886_v15  ;;  %605 = vmatprep.mubr.msk.bf16.mxu1 %vm770_vm0, %v769_v0  ;;  %v385_v18 = vpop.f32.mrb[4].mxu0 }
 0x119   :  { %603 = vmatprep.subr.bf16.mxu1 %v769_v0  ;;  %v386_v19 = vadd.f32 %v546_v8, %v385_v18  ;;  %v625_v20 = vpop.f32.mrb[5].mxu0 }
 0x11a   :  { %v388_v21 = vpop.f32.mrb[6].mxu0 }
 0x11b   :  { %v391_v22 = vmax.f32 %v386_v19, 0.0  ;;  %v626_v23 = vpop.f32.mrb[7].mxu0 }
 0x11c   :  { %604 = vmatpush3.bf16.msra.mxu1 %v665_v17 }
 0x11d   :  { %609 = vmatprep.subr.bf16.mxu1 %v769_v0  ;;  %v392_v24 = vpack.c.bf16 %v391_v22, %v391_v22 }
 0x11f   :  { %630 = vmatmul.mubr.msk.bf16.vlgmr.msra.gmra.mrb[8].mxu0 %vm172_vm3, %v392_v24 }
 0x120   :  { %642 = vmatpush3.bf16.msra.mxu0 %v666_v25  ;;  %649 = vmatprep.mubr.msk.bf16.mxu0 %vm770_vm0, %v769_v0 }
 0x121   :  { %643 = vmatprep.subr.bf16.mxu0 %v769_v0 }
 0x124   :  { %644 = vmatpush3.bf16.msra.mxu0 %v667_v26 }
 0x125   :  { %645 = vmatprep.subr.bf16.mxu0 %v769_v0 }
 0x128   :  { %646 = vmatpush3.bf16.msra.mxu0 %v668_v27 }
 0x129   :  { %647 = vmatprep.subr.bf16.mxu0 %v769_v0 }
 0x12c   :  { %648 = vmatpush3.bf16.msra.mxu0 %v669_v36 }
 0x1ea   :  { %v210_v29 = vpop.f32.mrb[0].mxu1 }
 0x1eb   :  { %v211_v30 = vadd.f32 %v547_v28, %v210_v29  ;;  %v599_v31 = vpop.f32.mrb[1].mxu1 }
 0x1ec   :  { %v213_v32 = vpop.f32.mrb[2].mxu1 }
 0x1ed   :  { %v216_v33 = vmax.f32 %v211_v30, 0.0  ;;  %v600_v34 = vpop.f32.mrb[3].mxu1 }
 0x1ef   :  { %v217_v35 = vpack.c.bf16 %v216_v33, %v216_v33 }
 0x1f1   :  { %606 = vmatmul.mubr.msk.bf16.vlgmr.msra.gmra.mrb[4].mxu1 %vm230_vm4, %v217_v35 }
 0x1f2   :  { %610 = vmatpush3.bf16.msra.mxu1 %v666_v25  ;;  %617 = vmatprep.mubr.msk.bf16.mxu1 %vm770_vm0, %v769_v0  ;;  %v430_v37 = vpop.f32.mrb[8].mxu0 }
 0x1f3   :  { %611 = vmatprep.subr.bf16.mxu1 %v769_v0  ;;  %v631_v38 = vpop.f32.mrb[9].mxu0  ;;  %v431_v48 = vadd.f32 %v547_v28, %v430_v37 }
 0x1f4   :  { %v433_v39 = vpop.f32.mrb[10].mxu0 }
 0x1f5   :  { %v632_v40 = vpop.f32.mrb[11].mxu0  ;;  %v436_v50 = vmax.f32 %v431_v48, 0.0 }
 0x1f6   :  { %612 = vmatpush3.bf16.msra.mxu1 %v667_v26 }
 0x1f7   :  { %613 = vmatprep.subr.bf16.mxu1 %v769_v0  ;;  %v437_v51 = vpack.c.bf16 %v436_v50, %v436_v50 }
 0x1fa   :  { %614 = vmatpush3.bf16.msra.mxu1 %v668_v27 }
 0x1fb   :  { %615 = vmatprep.subr.bf16.mxu1 %v769_v0 }
 0x1fe   :  { %616 = vmatpush3.bf16.msra.mxu1 %v669_v36 }
 0x1ff   :  { %633 = vmatprep.subr.bf16.mxu1 %v769_v0 }
 0x2c4   :  { %v268_v42 = vpop.f32.mrb[4].mxu1 }
 0x2c5   :  { %v269_v43 = vadd.f32 %v548_v41, %v268_v42  ;;  %v607_v44 = vpop.f32.mrb[5].mxu1 }
 0x2c6   :  { %v271_v45 = vpop.f32.mrb[6].mxu1 }
 0x2c7   :  { %v274_v46 = vmax.f32 %v269_v43, 0.0  ;;  %v608_v47 = vpop.f32.mrb[7].mxu1 }
 0x2c9   :  { %v275_v49 = vpack.c.bf16 %v274_v46, %v274_v46 }
 0x2cb   :  { %618 = vmatmul.mubr.msk.bf16.vlgmr.msra.gmra.mrb[8].mxu1 %vm300_vm5, %v275_v49 }
 0x2cc   :  { %634 = vmatpush3.bf16.msra.mxu1 %v886_v15  ;;  %637 = vmatprep.mubr.msk.bf16.mxu1 %vm770_vm0, %v769_v0 }
 0x2cd   :  { %635 = vmatprep.subr.bf16.mxu1 %v769_v0 }
 0x2d0   :  { %636 = vmatpush3.bf16.msra.mxu1 %v665_v17 }
 0x2d3   :  { %638 = vmatmul.mubr.msk.bf16.vlgmr.msra.gmra.mrb[12].mxu1 %vm230_vm4, %v437_v51 }
 0x39e   :  { %v338_v53 = vpop.f32.mrb[8].mxu1 }
 0x39f   :  { %v339_v54 = vadd.f32 %v549_v52, %v338_v53  ;;  %v619_v55 = vpop.f32.mrb[9].mxu1 }
 0x3a0   :  { %v341_v56 = vpop.f32.mrb[10].mxu1 }
 0x3a1   :  { %v344_v57 = vmax.f32 %v339_v54, 0.0  ;;  %v620_v58 = vpop.f32.mrb[11].mxu1 }
 0x3a3   :  { %345 = vst [vmem:[#allocation8] sm:$0xff] %v344_v57 }
 0x3a6   :  { %v475_v59 = vpop.f32.mrb[12].mxu1 }
 0x3a7   :  { %v476_v60 = vadd.f32 %v548_v41, %v475_v59  ;;  %v639_v61 = vpop.f32.mrb[13].mxu1 }
 0x3a8   :  { %v478_v62 = vpop.f32.mrb[14].mxu1 }
 0x3a9   :  { %v481_v63 = vmax.f32 %v476_v60, 0.0  ;;  %v640_v0 = vpop.f32.mrb[15].mxu1 }
 0x3ab   :  { %v482_v1 = vpack.c.bf16 %v481_v63, %v481_v63 }
 0x3ad   :  { %650 = vmatmul.mubr.msk.bf16.vlgmr.msra.gmra.mrb[12].mxu0 %vm300_vm5, %v482_v1 }
 0x480   :  { %v520_v2 = vpop.f32.mrb[12].mxu0 }
 0x481   :  { %v521_v3 = vadd.f32 %v549_v52, %v520_v2  ;;  %v651_v4 = vpop.f32.mrb[13].mxu0 }
 0x482   :  { %v523_v5 = vpop.f32.mrb[14].mxu0 }
 0x483   :  { %v526_v6 = vmax.f32 %v521_v3, 0.0  ;;  %v652_v7 = vpop.f32.mrb[15].mxu0 }
 0x485   :  { %527 = vst [vmem:[#allocation8 + $0x8] sm:$0xff] %v526_v6 }
 0x486   :  { %747 = shalt.err (!%p744_p0)
}
 0x487   :  { %s748_s23 = scalar_lea.hbm %s956_s9, 256 }
 0x488   :  { %p749_p1 = scmp.ne.s32.totalorder %s956_s9, %s748_s23  ;;  %p752_p2 = scmp.lt.u32.totalorder %s748_s23, %s956_s9 }
 0x48a   :  { %p754_p3 = pnand %p752_p2, %p749_p1 }
 0x48c   :  { %757 = shalt.err (!%p754_p3)
}
 0x48d   :  { %s772_s26 = smov 128   ;;  %s773_s27 = smov 8  }
 0x48e   :  { %539 = dma.vmem_to_hbm [thread:$0]  %s534_s20, 256, %s956_s9, [#allocation4], %s772_s26, %s772_s26, %s773_s27  }
 0x48f   :  { %762 = dma.done.wait [#allocation4], 256  }
 0x490   :  { %763 = vsyncadd [#allocation4], 4294967040 }
 0x491   :  { %543 = vsyncpa [#allocation3], 1 }
 0x492   :  { %544 = vsyncpa [#allocation6], 1 }
 0x493   :  { %545 = vsyncpa [#allocation4], 1 }

</bundles_post_ra>
